<compile_context>
chip_gen: v7x
topology: tpu7x:2x2x1
jax: 0.10.0
libtpu: 0.0.40
codegen_flags: <defaults>
</compile_context>

<pallas_src>
import functools

import jax
import jax.numpy as jnp
from jax.experimental import pallas as pl
from jax.experimental.pallas import tpu as pltpu


def _round_up(x: int, m: int) -> int:
    return ((x + m - 1) // m) * m


# --------------------------------------------------------------------------- #
# Kernels
# --------------------------------------------------------------------------- #

def ffn_resident_kernel(x_ref, w1_ref, b1_ref, w2_ref, b2_ref, o_ref):
    """One row tile; full W1/W2/biases resident in VMEM."""
    h = jnp.dot(x_ref[...], w1_ref[...], preferred_element_type=jnp.float32)
    h = jnp.maximum(h + b1_ref[...].astype(jnp.float32), 0.0)
    # Cast to the weight dtype before the (tm, d_ff) intermediate feeds the
    # second matmul: halves vreg/VMEM pressure and vld traffic for bf16 weights.
    h = h.astype(w2_ref.dtype)
    out = jnp.dot(h, w2_ref[...], preferred_element_type=jnp.float32)
    o_ref[...] = (out + b2_ref[...].astype(jnp.float32)).astype(o_ref.dtype)


def ffn_ff_tiled_kernel(x_ref, w1_ref, b1_ref, w2_ref, b2_ref, o_ref, acc_ref):
    """Streams W1/W2 over a d_ff ('arbitrary', innermost) grid axis.

    ReLU is elementwise, so relu(x @ W1 + b1) splits cleanly over d_ff slices;
    the partial second matmuls accumulate into a (tm, d_model) f32 scratch.
    """
    k = pl.program_id(1)

    @pl.when(k == 0)
    def _():
        acc_ref[...] = jnp.zeros_like(acc_ref)

    h = jnp.dot(x_ref[...], w1_ref[...], preferred_element_type=jnp.float32)
    h = jnp.maximum(h + b1_ref[...].astype(jnp.float32), 0.0).astype(w2_ref.dtype)
    acc_ref[...] += jnp.dot(h, w2_ref[...], preferred_element_type=jnp.float32)

    @pl.when(k == pl.num_programs(1) - 1)
    def _():
        o_ref[...] = (acc_ref[...] + b2_ref[...].astype(jnp.float32)).astype(o_ref.dtype)


# --------------------------------------------------------------------------- #
# One-time, cached hardware / capability probes
# --------------------------------------------------------------------------- #

@functools.lru_cache(maxsize=None)
def _device_kind() -> str:
    try:
        return jax.devices()[0].device_kind.lower()
    except Exception:
        return ""


@functools.lru_cache(maxsize=None)
def _vmem_budget_bytes() -> int:
    """Generation-aware scoped-VMEM budget, leaving headroom for compiler scratch."""
    try:
        cap = int(pltpu.get_tpu_info().vmem_capacity_bytes)
    except Exception:
        cap = 64 << 20  # conservative (v7x-sized) fallback
    # ~112 MiB on 128 MiB parts (v5e/v6e), ~48 MiB on v7x's 64 MiB per core.
    return max(cap - (16 << 20), 32 << 20)


@functools.lru_cache(maxsize=None)
def _pipeline_mode_supported() -> bool:
    """One-time probe: does this jax accept BlockSpec(pipeline_mode=pl.Buffered)?"""
    if not hasattr(pl, "Buffered"):
        return False
    try:
        def probe(x_ref, w_ref, o_ref):
            o_ref[...] = x_ref[...] + w_ref[...]

        call = pl.pallas_call(
            probe,
            out_shape=jax.ShapeDtypeStruct((8, 128), jnp.float32),
            grid_spec=pltpu.PrefetchScalarGridSpec(
                num_scalar_prefetch=0,
                grid=(2,),
                in_specs=[
                    pl.BlockSpec((8, 128), lambda i: (0, 0)),
                    pl.BlockSpec((8, 128), lambda i: (0, 0),
                                 pipeline_mode=pl.Buffered(1)),
                ],
                out_specs=pl.BlockSpec((8, 128), lambda i: (0, 0)),
            ),
        )
        jax.jit(call).lower(jax.ShapeDtypeStruct((8, 128), jnp.float32),
                            jax.ShapeDtypeStruct((8, 128), jnp.float32))
        return True
    except Exception:
        return False


# --------------------------------------------------------------------------- #
# Wrapper
# --------------------------------------------------------------------------- #

def positionwise_feed_forward(x, w1, b1, w2, b2, *,
                              row_tile=None, ff_tile=None, force_ff_tiling=False):
    """w_2(dropout(relu(w_1(x)))), eval-mode dropout (identity).

    x : [B, S, d_model]
    w1: [d_model, d_ff]   (pre-transposed vs. PyTorch's [out, in])
    b1: [d_ff]
    w2: [d_ff, d_model]
    b2: [d_model]

    For production sizes pass bf16 activations/weights (accumulation stays f32
    inside the kernel) and keep d_model a multiple of 128 for lane-dense stores.
    """
    B, S, d_model = x.shape
    d_ff = w1.shape[1]
    rows = B * S
    out_dtype = x.dtype

    kind = _device_kind()
    is_v7x = ("v7" in kind) or ("7x" in kind)
    budget = _vmem_budget_bytes()
    single_buf_ok = _pipeline_mode_supported()

    # ---- row tile ---------------------------------------------------------
    if row_tile is None:
        # v5e: per-step overhead already <7% at tm=256; v6e/v7x MXUs are fast
        # enough that tm=512 is needed to amortize the ~0.35us step overhead.
        row_tile = 256 if "v5" in kind else 512
    if rows < 8:
        tm = rows                      # block == full dim (allowed by layout rules)
    else:
        tm = max(8, (min(int(row_tile), rows) // 8) * 8)
    if is_v7x and rows >= 16 and pl.cdiv(rows, tm) < 2:
        # The 'parallel' row axis shards across v7x's 2 TensorCores; make sure
        # there are at least 2 grid steps so neither core sits idle.
        tm = max(8, ((rows // 2) // 8) * 8)

    itm_x = x.dtype.itemsize
    itm_o = jnp.dtype(out_dtype).itemsize
    itm_w2 = w2.dtype.itemsize
    w_bytes = (d_model * d_ff * w1.dtype.itemsize
               + d_ff * d_model * itm_w2
               + d_ff * b1.dtype.itemsize
               + d_model * b2.dtype.itemsize)

    def resident_need(tm_):
        xo = 2 * tm_ * d_model * (itm_x + itm_o)        # double-buffered x + out tiles
        h = tm_ * d_ff * (4 + itm_w2)                   # f32 intermediate + cast copy
        wbuf = 1 if single_buf_ok else 2                # weights counted once w/ Buffered(1)
        return xo + wbuf * w_bytes + h + (2 << 20)

    def tiled_need(tm_, tf_, wbuf_):
        xo = 2 * tm_ * d_model * (itm_x + itm_o)
        wstream = wbuf_ * (d_model * tf_ * w1.dtype.itemsize
                           + tf_ * d_model * itm_w2
                           + tf_ * b1.dtype.itemsize)
        b2buf = 2 * d_model * b2.dtype.itemsize
        acc = tm_ * d_model * 4
        h = tm_ * tf_ * (4 + itm_w2)
        return xo + wstream + b2buf + acc + h + (2 << 20)

    def pick_ff_tile():
        if ff_tile is not None:
            if d_ff % int(ff_tile) or int(ff_tile) % 128:
                raise ValueError("ff_tile must divide d_ff and be a multiple of 128")
            return int(ff_tile)
        for cand in (2048, 1536, 1024, 768, 512, 384, 256, 128):
            if cand <= d_ff and d_ff % cand == 0:
                return cand
        return None

    # ---- dispatch: resident weights vs. streamed-weight (d_ff tiled) ------
    use_tiled = force_ff_tiling or (resident_need(tm) > budget)
    tf = pick_ff_tile() if use_tiled else None
    if use_tiled and tf is None:
        # TODO(synk): d_ff with no 128-multiple divisor and non-resident weights:
        # fall back to resident weights and let the compiler spill if needed.
        use_tiled = False

    if use_tiled:
        # Deeper buffering on the streamed weights hides HBM latency once
        # weight DMA (not the MXU) is the exposed cost.
        wbuf = 3 if (single_buf_ok and d_ff // tf >= 3) else 2
        if wbuf == 3 and tiled_need(tm, tf, 3) > budget:
            wbuf = 2
        while tiled_need(tm, tf, wbuf) > budget and tm > 64:
            tm = max(64, ((tm // 2) // 8) * 8)
        need = tiled_need(tm, tf, wbuf)
    else:
        wbuf = 2
        need = resident_need(tm)

    vmem_limit = int(min(budget, max(int(need * 1.25), 32 << 20)))

    grid_rows = pl.cdiv(rows, tm)
    x2d = x.reshape(rows, d_model)
    b1_2d = b1.reshape(1, d_ff)
    b2_2d = b2.reshape(1, d_model)

    # Advisory cost estimate so XLA can schedule/overlap around the custom call.
    flops = 4 * rows * d_model * d_ff
    w_traffic = w_bytes * (grid_rows if use_tiled else 1)
    cost = pl.CostEstimate(flops=flops, transcendentals=0,
                           bytes_accessed=int(rows * d_model * (itm_x + itm_o) + w_traffic))

    # Grid-invariant blocks: single-buffer them when supported (pure VMEM savings).
    const_kwargs = dict(pipeline_mode=pl.Buffered(1)) if single_buf_ok else {}

    if not use_tiled:
        grid_spec = pltpu.PrefetchScalarGridSpec(
            num_scalar_prefetch=0,
            grid=(grid_rows,),
            in_specs=[
                pl.BlockSpec((tm, d_model), lambda i: (i, 0)),                     # x tile
                pl.BlockSpec((d_model, d_ff), lambda i: (0, 0), **const_kwargs),   # W1
                pl.BlockSpec((1, d_ff), lambda i: (0, 0), **const_kwargs),         # b1
                pl.BlockSpec((d_ff, d_model), lambda i: (0, 0), **const_kwargs),   # W2
                pl.BlockSpec((1, d_model), lambda i: (0, 0), **const_kwargs),      # b2
            ],
            out_specs=pl.BlockSpec((tm, d_model), lambda i: (i, 0)),
        )
        call = pl.pallas_call(
            ffn_resident_kernel,
            out_shape=jax.ShapeDtypeStruct((rows, d_model), out_dtype),
            grid_spec=grid_spec,
            compiler_params=pltpu.CompilerParams(
                dimension_semantics=("parallel",),
                vmem_limit_bytes=vmem_limit,
            ),
            cost_estimate=cost,
        )
    else:
        stream_kwargs = (dict(pipeline_mode=pl.Buffered(wbuf))
                         if (single_buf_ok and wbuf != 2) else {})
        grid_spec = pltpu.PrefetchScalarGridSpec(
            num_scalar_prefetch=0,
            grid=(grid_rows, d_ff // tf),                 # reduction (d_ff) axis last
            in_specs=[
                pl.BlockSpec((tm, d_model), lambda i, k: (i, 0)),                   # x tile
                pl.BlockSpec((d_model, tf), lambda i, k: (0, k), **stream_kwargs),  # W1 slice
                pl.BlockSpec((1, tf), lambda i, k: (0, k), **stream_kwargs),        # b1 slice
                pl.BlockSpec((tf, d_model), lambda i, k: (k, 0), **stream_kwargs),  # W2 slice
                pl.BlockSpec((1, d_model), lambda i, k: (0, 0), **const_kwargs),    # b2
            ],
            out_specs=pl.BlockSpec((tm, d_model), lambda i, k: (i, 0)),
            scratch_shapes=[pltpu.VMEM((tm, d_model), jnp.float32)],
        )
        call = pl.pallas_call(
            ffn_ff_tiled_kernel,
            out_shape=jax.ShapeDtypeStruct((rows, d_model), out_dtype),
            grid_spec=grid_spec,
            compiler_params=pltpu.CompilerParams(
                dimension_semantics=("parallel", "arbitrary"),
                vmem_limit_bytes=vmem_limit,
            ),
            cost_estimate=cost,
        )

    out2d = call(x2d, w1, b1_2d, w2, b2_2d)
    return out2d.reshape(B, S, d_model)


# --------------------------------------------------------------------------- #
# Params / reference
# --------------------------------------------------------------------------- #

def init_params(key, d_model, d_ff, dtype=jnp.float32):
    """Deterministic init mimicking nn.Linear default (uniform +-1/sqrt(fan_in))."""
    k1, k2, k3, k4 = jax.random.split(key, 4)
    lim1 = 1.0 / (d_model ** 0.5)
    lim2 = 1.0 / (d_ff ** 0.5)
    # Stored already transposed relative to PyTorch's [out, in] convention.
    w1 = jax.random.uniform(k1, (d_model, d_ff), dtype, -lim1, lim1)
    b1 = jax.random.uniform(k2, (d_ff,), dtype, -lim1, lim1)
    w2 = jax.random.uniform(k3, (d_ff, d_model), dtype, -lim2, lim2)
    b2 = jax.random.uniform(k4, (d_model,), dtype, -lim2, lim2)
    return w1, b1, w2, b2


def _reference(x, w1, b1, w2, b2):
    return jnp.maximum(x.astype(jnp.float32) @ w1.astype(jnp.float32)
                       + b1.astype(jnp.float32), 0.0) @ w2.astype(jnp.float32) \
           + b2.astype(jnp.float32)


if __name__ == "__main__":
    key = jax.random.PRNGKey(0)
    kx, kp, kx2, kp2, kx3 = jax.random.split(key, 5)

    # --- 1. f32, resident-weight path (eval-mode dropout == identity) -------
    B, S, d_model, d_ff = 2, 8, 32, 64
    x = jax.random.normal(kx, (B, S, d_model), jnp.float32)
    w1, b1, w2, b2 = init_params(kp, d_model, d_ff)
    out = jax.block_until_ready(positionwise_feed_forward(x, w1, b1, w2, b2))
    ref = _reference(x, w1, b1, w2, b2)
    assert out.shape == (B, S, d_model)
    assert jnp.allclose(out, ref, atol=1e-5, rtol=1e-5), "f32 resident mismatch"

    # --- 2. rows not divisible by the row tile (masked tail-block store) ----
    B2, S2 = 3, 5
    x_odd = jax.random.normal(kx2, (B2, S2, d_model), jnp.float32)
    out_odd = jax.block_until_ready(positionwise_feed_forward(x_odd, w1, b1, w2, b2))
    ref_odd = _reference(x_odd, w1, b1, w2, b2)
    assert out_odd.shape == (B2, S2, d_model)
    assert jnp.allclose(out_odd, ref_odd, atol=1e-5, rtol=1e-5), "ragged-rows mismatch"

    # --- 3. forced d_ff-streamed path (accumulator over 'arbitrary' axis) ---
    d_model3, d_ff3 = 128, 256
    x3 = jax.random.normal(kx3, (B, S, d_model3), jnp.float32)
    w1c, b1c, w2c, b2c = init_params(kp2, d_model3, d_ff3)
    out3 = jax.block_until_ready(
        positionwise_feed_forward(x3, w1c, b1c, w2c, b2c,
                                  force_ff_tiling=True, ff_tile=128))
    ref3 = _reference(x3, w1c, b1c, w2c, b2c)
    assert out3.shape == (B, S, d_model3)
    # slightly looser: split-K accumulation order / MXU pass count may differ
    assert jnp.allclose(out3, ref3, atol=5e-3, rtol=5e-3), "d_ff-tiled mismatch"

    # --- 4. bf16 weights/activations, f32 accumulation (production config) --
    xb = x.astype(jnp.bfloat16)
    w1b, b1b, w2b, b2b = (a.astype(jnp.bfloat16) for a in (w1, b1, w2, b2))
    out_b = jax.block_until_ready(positionwise_feed_forward(xb, w1b, b1b, w2b, b2b))
    ref_b = _reference(xb, w1b, b1b, w2b, b2b)
    assert jnp.allclose(out_b.astype(jnp.float32), ref_b,
                        atol=1e-1, rtol=1e-1), "bf16 mismatch"

    print("KERNEL_OK")
</pallas_src>

<mosaic_0001>
module attributes {stable_mosaic.version = 11 : i64} {
  func.func @ffn_resident_kernel(%arg0: i32, %arg1: memref<16x32xf32, #tpu.memory_space<vmem>>, %arg2: memref<32x64xf32, #tpu.memory_space<vmem>>, %arg3: memref<1x64xf32, #tpu.memory_space<vmem>>, %arg4: memref<64x32xf32, #tpu.memory_space<vmem>>, %arg5: memref<1x32xf32, #tpu.memory_space<vmem>>, %arg6: memref<16x32xf32, #tpu.memory_space<vmem>>) attributes {dimension_semantics = [#tpu.dimension_semantics<parallel>], iteration_bounds = array<i64: 1>, scalar_prefetch = 0 : i64, scratch_operands = 0 : i64, tpu.core_type = #tpu.core_type<tc>, window_params = [{transform_indices = @transform_0, window_bounds = array<i64: 16, 32>}, {pipeline_mode = #tpu.pipeline_mode<synchronous>, transform_indices = @transform_1, window_bounds = array<i64: 32, 64>}, {pipeline_mode = #tpu.pipeline_mode<synchronous>, transform_indices = @transform_2, window_bounds = array<i64: 1, 64>}, {pipeline_mode = #tpu.pipeline_mode<synchronous>, transform_indices = @transform_3, window_bounds = array<i64: 64, 32>}, {pipeline_mode = #tpu.pipeline_mode<synchronous>, transform_indices = @transform_4, window_bounds = array<i64: 1, 32>}, {transform_indices = @transform_5, window_bounds = array<i64: 16, 32>}]} {
    %c0 = arith.constant 0 : index
    %c0_0 = arith.constant 0 : index
    %0 = vector.load %arg1[%c0, %c0_0] : memref<16x32xf32, #tpu.memory_space<vmem>>, vector<16x32xf32>
    %c0_1 = arith.constant 0 : index
    %c0_2 = arith.constant 0 : index
    %1 = vector.load %arg2[%c0_1, %c0_2] : memref<32x64xf32, #tpu.memory_space<vmem>>, vector<32x64xf32>
    %cst = arith.constant dense<0.000000e+00> : vector<16x64xf32>
    %2 = tpu.matmul %0, %1, %cst {dimension_numbers = #tpu.dot_dimension_numbers<[1], [0], [0], [1], [0, 0, 1, 1], [], []>} : vector<16x32xf32>, vector<32x64xf32>, vector<16x64xf32> -> vector<16x64xf32>
    %c0_3 = arith.constant 0 : index
    %c0_4 = arith.constant 0 : index
    %3 = vector.load %arg3[%c0_3, %c0_4] : memref<1x64xf32, #tpu.memory_space<vmem>>, vector<1x64xf32>
    %4 = vector.broadcast %3 : vector<1x64xf32> to vector<16x64xf32>
    %5 = arith.addf %2, %4 : vector<16x64xf32>
    %cst_5 = arith.constant 0.000000e+00 : f32
    %6 = vector.broadcast %cst_5 : f32 to vector<16x64xf32>
    %7 = arith.maximumf %5, %6 : vector<16x64xf32>
    %c0_6 = arith.constant 0 : index
    %c0_7 = arith.constant 0 : index
    %8 = vector.load %arg4[%c0_6, %c0_7] : memref<64x32xf32, #tpu.memory_space<vmem>>, vector<64x32xf32>
    %cst_8 = arith.constant dense<0.000000e+00> : vector<16x32xf32>
    %9 = tpu.matmul %7, %8, %cst_8 {dimension_numbers = #tpu.dot_dimension_numbers<[1], [0], [0], [1], [0, 0, 1, 1], [], []>} : vector<16x64xf32>, vector<64x32xf32>, vector<16x32xf32> -> vector<16x32xf32>
    %c0_9 = arith.constant 0 : index
    %c0_10 = arith.constant 0 : index
    %10 = vector.load %arg5[%c0_9, %c0_10] : memref<1x32xf32, #tpu.memory_space<vmem>>, vector<1x32xf32>
    %11 = vector.broadcast %10 : vector<1x32xf32> to vector<16x32xf32>
    %12 = arith.addf %9, %11 : vector<16x32xf32>
    %c0_11 = arith.constant 0 : index
    %c0_12 = arith.constant 0 : index
    %13 = vector.load %arg6[%c0_11, %c0_12] : memref<16x32xf32, #tpu.memory_space<vmem>>, vector<16x32xf32>
    tpu.vector_store %arg6[%c0_11, %c0_12], %12 {strides = array<i32>} : memref<16x32xf32, #tpu.memory_space<vmem>>, vector<16x32xf32>,
    return
  }
  func.func @transform_0(%arg0: i32) -> (i32, i32) {
    %c0_i32 = arith.constant 0 : i32
    %c0_i32_0 = arith.constant 0 : i32
    return %arg0, %c0_i32 : i32, i32
  }
  func.func @transform_1(%arg0: i32) -> (i32, i32) {
    %c0_i32 = arith.constant 0 : i32
    %c0_i32_0 = arith.constant 0 : i32
    %c0_i32_1 = arith.constant 0 : i32
    return %c0_i32, %c0_i32_0 : i32, i32
  }
  func.func @transform_2(%arg0: i32) -> (i32, i32) {
    %c0_i32 = arith.constant 0 : i32
    %c0_i32_0 = arith.constant 0 : i32
    %c0_i32_1 = arith.constant 0 : i32
    return %c0_i32, %c0_i32_0 : i32, i32
  }
  func.func @transform_3(%arg0: i32) -> (i32, i32) {
    %c0_i32 = arith.constant 0 : i32
    %c0_i32_0 = arith.constant 0 : i32
    %c0_i32_1 = arith.constant 0 : i32
    return %c0_i32, %c0_i32_0 : i32, i32
  }
  func.func @transform_4(%arg0: i32) -> (i32, i32) {
    %c0_i32 = arith.constant 0 : i32
    %c0_i32_0 = arith.constant 0 : i32
    %c0_i32_1 = arith.constant 0 : i32
    return %c0_i32, %c0_i32_0 : i32, i32
  }
  func.func @transform_5(%arg0: i32) -> (i32, i32) {
    %c0_i32 = arith.constant 0 : i32
    %c0_i32_0 = arith.constant 0 : i32
    return %arg0, %c0_i32 : i32, i32
  }
}

</mosaic_0001>

<bundles_post_ra>
// kernel: tpu_custom_call.1
= control target key start
LH: loop header
LB: loop body
LE: loop exit
PB: predicated region body
PF: predicated region fallthrough
CT: control target
= control target key end

     0   :  { %vm34_vm0 = vcmask 261120   ;;  %s433_s0 = inlined_call_operand.vmem [shape: f32[16,32], index: 0, kind: input, shape index: {}]   ;;  %s434_s1 = inlined_call_operand.vmem [shape: f32[32,64], index: 1, kind: input, shape index: {}]   ;;  %s435_s2 = inlined_call_operand.vmem [shape: f32[1,64], index: 2, kind: input, shape index: {}]   ;;  %s436_s3 = inlined_call_operand.vmem [shape: f32[64,32], index: 3, kind: input, shape index: {}]   ;;  %s437_s4 = inlined_call_operand.vmem [shape: f32[1,32], index: 4, kind: input, shape index: {}]   ;;  %s438_s5 = inlined_call_operand.hbm [shape: f32[16,32], index: 5, kind: output, shape index: {}]  }
   0x1   :  { %v23_v0 = vld [vmem:[%s434_s1] sm:$0xff]  ;;  %v24_v1 = vld [vmem:[%s434_s1 + $0x8] sm:$0xff]  ;;  %v25_v2 = vld [vmem:[%s434_s1 + $0x10] sm:$0xff] }
   0x2   :  { %v285_v3 = vpack.c.bf16 %v24_v1, %v23_v0  ;;  %v26_v4 = vld [vmem:[%s434_s1 + $0x18] sm:$0xff]  ;;  %v21_v5 = vld [vmem:[%s433_s0] sm:$0xff]  ;;  %v119_v8 = vld [vmem:[%s436_s3 + $0x8] sm:$0xff] }
   0x3   :  { %v289_v6 = vpack.c.bf16 %v26_v4, %v25_v2  ;;  %263 = vmatprep.mubr.msk.f32.mxu0 %vm34_vm0, %v21_v5  ;;  %v118_v7 = vld [vmem:[%s436_s3] sm:$0xff]  ;;  %v120_v9 = vld [vmem:[%s436_s3 + $0x10] sm:$0xff]  ;;  %v121_v11 = vld [vmem:[%s436_s3 + $0x18] sm:$0xff] }
   0x4   :  { %286 = vmatprep.subr.bf16.mxu0 %v285_v3  ;;  %v293_v10 = vpack.c.bf16 %v119_v8, %v118_v7  ;;  %v297_v12 = vpack.c.bf16 %v121_v11, %v120_v9  ;;  %v122_v13 = vld [vmem:[%s436_s3 + $0x20] sm:$0xff]  ;;  %v123_v14 = vld [vmem:[%s436_s3 + $0x28] sm:$0xff] }
   0x5   :  { %288 = vmatpush3.bf16.msra.mxu0 %v285_v3 }
   0x6   :  { %10 = vsyncpa [#allocation3], 0  ;;  %290 = vmatprep.subr.bf16.mxu0 %v289_v6  ;;  %294 = vmatprep.subr.bf16.mxu1 %v293_v10  ;;  %v301_v15 = vpack.c.bf16 %v123_v14, %v122_v13  ;;  %v22_v16 = vld [vmem:[%s433_s0 + $0x8] sm:$0xff]  ;;  %v124_v17 = vld [vmem:[%s436_s3 + $0x30] sm:$0xff]  ;;  %vm133_vm1 = vcmask 523264  }
   0x7   :  { %296 = vmatpush3.bf16.msra.mxu1 %v293_v10  ;;  %v125_v18 = vld [vmem:[%s436_s3 + $0x38] sm:$0xff]  ;;  %v233_v20 = vld [vmem:[%s435_s2] ss:$0 sm:$0xff]  ;;  %s336_s3 = smov [#allocation2]  }
   0x8   :  { %298 = vmatprep.subr.bf16.mxu1 %v297_v12  ;;  %v305_v19 = vpack.c.bf16 %v125_v18, %v124_v17  ;;  %v236_v27 = vld [vmem:[%s437_s4] ss:$0 sm:$0xff]  ;;  %s222_s23 = sshll.u32 %s336_s3, 4  ;;  %s223_s23 = int_to_ptr.vmem [resolvable:$true] %s222_s23 }
   0x9   :  { %292 = vmatpush3.bf16.msra.mxu0 %v289_v6  ;;  %s312_s2 = scalar_lea.vmem %s223_s23, 256  ;;  %p317_p1 = scmp.lt.s32.totalorder %s223_s23, %s223_s23 }
   0xa   :  { %p313_p0 = scmp.ne.s32.totalorder %s223_s23, %s312_s2  ;;  %p318_p2 = scmp.lt.s32.totalorder %s312_s2, %s312_s2 }
   0xb   :  { %300 = vmatpush3.bf16.msra.mxu1 %v297_v12 }
   0xc   :  { %264 = vmatmul.mubr.msk.f32.vlgmr.msra.gmra.mrb[0].mxu0 %vm34_vm0, %v22_v16  ;;  %302 = vmatprep.subr.bf16.mxu1 %v301_v15  ;;  %p319_p3 = por %p318_p2, %p317_p1 }
   0xe   :  { %p320_p4 = pnand %p319_p3, %p313_p0 }
   0xf   :  { %304 = vmatpush3.bf16.msra.mxu1 %v301_v15 }
  0x10   :  { %306 = vmatprep.subr.bf16.mxu1 %v305_v19 }
  0x13   :  { %308 = vmatpush3.bf16.msra.mxu1 %v305_v19 }
  0xdf   :  { %v265_v21 = vpop.f32.mrb[0].mxu0 }
  0xe0   :  { %v113_v22 = vadd.f32 %v265_v21, %v233_v20  ;;  %v107_v23 = vpop.f32.mrb[1].mxu0 }
  0xe1   :  { %v108_v24 = vadd.f32 %v233_v20, %v107_v23 }
  0xe2   :  { %v117_v26 = vmax.f32 %v113_v22, 0.0 }
  0xe3   :  { %v116_v25 = vmax.f32 %v108_v24, 0.0 }
  0xe5   :  { %282 = vmatprep.mubr.msk.f32.mxu1 %vm133_vm1, %v116_v25 }
  0xe6   :  { %283 = vmatmul.mubr.msk.f32.vlgmr.msra.gmra.mrb[0].mxu1 %vm133_vm1, %v117_v26 }
 0x1b9   :  { %v284_v28 = vpop.f32.mrb[0].mxu1 }
 0x1ba   :  { %v212_v29 = vadd.f32 %v284_v28, %v236_v27  ;;  %v206_v30 = vpop.f32.mrb[1].mxu1 }
 0x1bb   :  { %v207_v31 = vadd.f32 %v236_v27, %v206_v30 }
 0x1bc   :  { %216 = vst.msk [vmem:[#allocation2 + $0x8] sm:$0xff] %vm34_vm0, %v212_v29 }
 0x1bd   :  { %215 = vst.msk [vmem:[#allocation2] sm:$0xff] %vm34_vm0, %v207_v31 }
 0x1be   :  { %323 = shalt.err (!%p320_p4)
}
 0x1bf   :  { %s324_s25 = scalar_lea.hbm %s438_s5, 256 }
 0x1c0   :  { %p325_p5 = scmp.ne.s32.totalorder %s438_s5, %s324_s25  ;;  %p328_p6 = scmp.lt.u32.totalorder %s324_s25, %s438_s5 }
 0x1c2   :  { %p330_p7 = pnand %p328_p6, %p325_p5 }
 0x1c4   :  { %333 = shalt.err (!%p330_p7)
}
 0x1c5   :  { %s337_s30 = smov 128   ;;  %s338_s6 = smov 8  }
 0x1c6   :  { %228 = dma.vmem_to_hbm [thread:$0]  %s223_s23, 256, %s438_s5, [#allocation3], %s337_s30, %s337_s30, %s338_s6  }
 0x1c7   :  { %334 = dma.done.wait [#allocation3], 256  }
 0x1c8   :  { %335 = vsyncadd [#allocation3], 4294967040 }
 0x1c9   :  { %232 = vsyncpa [#allocation3], 1 }

</bundles_post_ra>
